<compile_context>
chip_gen: v7x
topology: tpu7x:2x2x1
jax: 0.10.0
libtpu: 0.0.40
codegen_flags: <defaults>
</compile_context>

<pallas_src>
import functools

import jax
import jax.numpy as jnp
from jax import lax
from jax.experimental import pallas as pl
from jax.experimental.pallas import tpu as pltpu


def _round_up(n, m):
    return ((n + m - 1) // m) * m


def _ada_layer_norm_kernel(*refs, eps, cond_is_x):
    if cond_is_x:
        (x_ref, w1_ref, b1_ref,
         wsc_ref, bsc_ref, wsh_ref, bsh_ref, o_ref) = refs
        cond_ref = x_ref
    else:
        (x_ref, cond_ref, w1_ref, b1_ref,
         wsc_ref, bsc_ref, wsh_ref, bsh_ref, o_ref) = refs

    # ---- conditioning MLP on the MXU: Linear(D,D) -> SiLU -> Linear(D,D) x2 ----
    c = cond_ref[...].astype(w1_ref.dtype)                         # (tm, D)
    h = jnp.dot(c, w1_ref[...], preferred_element_type=jnp.float32)
    h = h + b1_ref[...].astype(jnp.float32)                        # (tm, D) f32
    h = h * jax.nn.sigmoid(h)                                      # SiLU (EUP slot)
    hm = h.astype(wsc_ref.dtype)
    scale = (jnp.dot(hm, wsc_ref[...], preferred_element_type=jnp.float32)
             + bsc_ref[...].astype(jnp.float32))                   # (tm, D)
    shift = (jnp.dot(hm, wsh_ref[...], preferred_element_type=jnp.float32)
             + bsh_ref[...].astype(jnp.float32))                   # (tm, D)

    # ---- LayerNorm over last dim (no affine), f32 statistics ----
    x = x_ref[...].astype(jnp.float32)                             # (tm, D)
    mean = jnp.mean(x, axis=-1, keepdims=True)
    diff = x - mean
    var = jnp.mean(diff * diff, axis=-1, keepdims=True)
    xn = diff * lax.rsqrt(var + eps)

    o_ref[...] = (xn * (1.0 + scale) + shift).astype(o_ref.dtype)


def ada_layer_norm(x, w_emb, b_emb, w_lin, b_lin, cond=None, *,
                   eps=1e-5, block_rows=256):
    """AdaLayerNorm forward.

    x:     [..., D]          (any leading dims; last dim = embedding_dim)
    w_emb: [D, D]            nn.Linear(D, D).weight (PyTorch convention)
    b_emb: [D]
    w_lin: [2D, D]           nn.Linear(D, 2D).weight
    b_lin: [2D]
    cond:  optional, broadcastable to x.shape (defaults to x)
    """
    *lead, D = x.shape
    M = 1
    for d in lead:
        M *= d
    x2 = x.reshape(M, D)

    cond_is_x = cond is None
    if not cond_is_x:
        cond2 = jnp.broadcast_to(cond, x.shape).reshape(M, D)

    # Transpose / split the PyTorch weights in the wrapper so the kernel does
    # plain row-major (tm, D) @ (D, D) matmuls and keeps outputs lane-dense.
    w1 = jnp.asarray(w_emb).T                     # (D, D)
    b1 = jnp.asarray(b_emb).reshape(1, D)
    w2t = jnp.asarray(w_lin).T                    # (D, 2D)
    wsc, wsh = w2t[:, :D], w2t[:, D:]             # scale / shift halves (D, D)
    b2 = jnp.asarray(b_lin)
    bsc, bsh = b2[:D].reshape(1, D), b2[D:].reshape(1, D)

    # Token tile: big enough to amortize per-step overhead, small enough that
    # double-buffered in/out tiles + resident weights fit every chip's VMEM.
    tm = block_rows if M > block_rows else _round_up(M, 8)
    M_pad = _round_up(M, tm)
    if M_pad != M:
        pad = M_pad - M
        x2 = jnp.pad(x2, ((0, pad), (0, 0)))
        if not cond_is_x:
            cond2 = jnp.pad(cond2, ((0, pad), (0, 0)))

    row_spec = pl.BlockSpec((tm, D), lambda i: (i, 0))
    full = lambda shape: pl.BlockSpec(shape, lambda i: (0, 0))

    in_specs = [row_spec]
    operands = [x2]
    if not cond_is_x:
        in_specs.append(row_spec)
        operands.append(cond2)
    in_specs += [full((D, D)), full((1, D)),
                 full((D, D)), full((1, D)),
                 full((D, D)), full((1, D))]
    operands += [w1, b1, wsc, bsc, wsh, bsh]

    kern = functools.partial(_ada_layer_norm_kernel, eps=eps, cond_is_x=cond_is_x)

    out = pl.pallas_call(
        kern,
        out_shape=jax.ShapeDtypeStruct((M_pad, D), x.dtype),
        grid_spec=pltpu.PrefetchScalarGridSpec(
            num_scalar_prefetch=0,
            grid=(M_pad // tm,),
            in_specs=in_specs,
            out_specs=row_spec,
        ),
        compiler_params=pltpu.CompilerParams(
            dimension_semantics=("parallel",),
            vmem_limit_bytes=48 * 1024 * 1024,
        ),
    )(*operands)

    return out[:M].reshape(*lead, D)


def _reference(x, w_emb, b_emb, w_lin, b_lin, cond=None, eps=1e-5):
    # Pure-JAX mirror of the PyTorch forward.
    c = x if cond is None else jnp.broadcast_to(cond, x.shape)
    e = c @ w_emb.T + b_emb
    e = e * jax.nn.sigmoid(e)            # SiLU
    e = e @ w_lin.T + b_lin
    D = x.shape[-1]
    scale, shift = e[..., :D], e[..., D:]
    mean = x.mean(-1, keepdims=True)
    var = ((x - mean) ** 2).mean(-1, keepdims=True)
    xn = (x - mean) / jnp.sqrt(var + eps)
    return xn * (1.0 + scale) + shift


if __name__ == "__main__":
    B, T, D = 2, 8, 32
    eps = 1e-5

    key = jax.random.PRNGKey(0)
    kx, kc, kw1, kb1, kw2, kb2 = jax.random.split(key, 6)

    x = jax.random.normal(kx, (B, T, D), dtype=jnp.float32)
    cond = jax.random.normal(kc, (B, T, D), dtype=jnp.float32)

    # PyTorch-style uniform Linear init (deterministic).
    bound1 = 1.0 / jnp.sqrt(jnp.float32(D))
    w_emb = jax.random.uniform(kw1, (D, D), jnp.float32, -bound1, bound1)
    b_emb = jax.random.uniform(kb1, (D,), jnp.float32, -bound1, bound1)
    w_lin = jax.random.uniform(kw2, (2 * D, D), jnp.float32, -bound1, bound1)
    b_lin = jax.random.uniform(kb2, (2 * D,), jnp.float32, -bound1, bound1)

    # Path 1: cond=None (self-conditioning, the module's default).
    out = ada_layer_norm(x, w_emb, b_emb, w_lin, b_lin, cond=None, eps=eps)
    out = jax.block_until_ready(out)
    ref = _reference(x, w_emb, b_emb, w_lin, b_lin, cond=None, eps=eps)
    assert out.shape == (B, T, D)
    assert jnp.allclose(out, ref, atol=1e-4, rtol=1e-4), "mismatch (cond=None)"

    # Path 2: explicit cond.
    out_c = ada_layer_norm(x, w_emb, b_emb, w_lin, b_lin, cond=cond, eps=eps)
    out_c = jax.block_until_ready(out_c)
    ref_c = _reference(x, w_emb, b_emb, w_lin, b_lin, cond=cond, eps=eps)
    assert jnp.allclose(out_c, ref_c, atol=1e-4, rtol=1e-4), "mismatch (explicit cond)"

    print("KERNEL_OK")
</pallas_src>

<mosaic_0001>
module attributes {stable_mosaic.version = 11 : i64} {
  func.func @_ada_layer_norm_kernel(%arg0: i32, %arg1: memref<16x32xf32, #tpu.memory_space<vmem>>, %arg2: memref<32x32xf32, #tpu.memory_space<vmem>>, %arg3: memref<1x32xf32, #tpu.memory_space<vmem>>, %arg4: memref<32x32xf32, #tpu.memory_space<vmem>>, %arg5: memref<1x32xf32, #tpu.memory_space<vmem>>, %arg6: memref<32x32xf32, #tpu.memory_space<vmem>>, %arg7: memref<1x32xf32, #tpu.memory_space<vmem>>, %arg8: memref<16x32xf32, #tpu.memory_space<vmem>>) attributes {dimension_semantics = [#tpu.dimension_semantics<parallel>], iteration_bounds = array<i64: 1>, scalar_prefetch = 0 : i64, scratch_operands = 0 : i64, tpu.core_type = #tpu.core_type<tc>, window_params = [{transform_indices = @transform_0, window_bounds = array<i64: 16, 32>}, {pipeline_mode = #tpu.pipeline_mode<synchronous>, transform_indices = @transform_1, window_bounds = array<i64: 32, 32>}, {pipeline_mode = #tpu.pipeline_mode<synchronous>, transform_indices = @transform_2, window_bounds = array<i64: 1, 32>}, {pipeline_mode = #tpu.pipeline_mode<synchronous>, transform_indices = @transform_3, window_bounds = array<i64: 32, 32>}, {pipeline_mode = #tpu.pipeline_mode<synchronous>, transform_indices = @transform_4, window_bounds = array<i64: 1, 32>}, {pipeline_mode = #tpu.pipeline_mode<synchronous>, transform_indices = @transform_5, window_bounds = array<i64: 32, 32>}, {pipeline_mode = #tpu.pipeline_mode<synchronous>, transform_indices = @transform_6, window_bounds = array<i64: 1, 32>}, {transform_indices = @transform_7, window_bounds = array<i64: 16, 32>}]} {
    %c0 = arith.constant 0 : index
    %c0_0 = arith.constant 0 : index
    %0 = vector.load %arg1[%c0, %c0_0] : memref<16x32xf32, #tpu.memory_space<vmem>>, vector<16x32xf32>
    %c0_1 = arith.constant 0 : index
    %c0_2 = arith.constant 0 : index
    %1 = vector.load %arg2[%c0_1, %c0_2] : memref<32x32xf32, #tpu.memory_space<vmem>>, vector<32x32xf32>
    %cst = arith.constant dense<0.000000e+00> : vector<16x32xf32>
    %2 = tpu.matmul %0, %1, %cst {dimension_numbers = #tpu.dot_dimension_numbers<[1], [0], [0], [1], [0, 0, 1, 1], [], []>} : vector<16x32xf32>, vector<32x32xf32>, vector<16x32xf32> -> vector<16x32xf32>
    %c0_3 = arith.constant 0 : index
    %c0_4 = arith.constant 0 : index
    %3 = vector.load %arg3[%c0_3, %c0_4] : memref<1x32xf32, #tpu.memory_space<vmem>>, vector<1x32xf32>
    %4 = vector.broadcast %3 : vector<1x32xf32> to vector<16x32xf32>
    %5 = arith.addf %2, %4 : vector<16x32xf32>
    %6 = arith.negf %5 : vector<16x32xf32>
    %7 = math.exp %6 : vector<16x32xf32>
    %cst_5 = arith.constant 1.000000e+00 : f32
    %8 = vector.broadcast %cst_5 : f32 to vector<16x32xf32>
    %9 = arith.addf %8, %7 : vector<16x32xf32>
    %10 = arith.divf %8, %9 : vector<16x32xf32>
    %11 = arith.mulf %5, %10 : vector<16x32xf32>
    %c0_6 = arith.constant 0 : index
    %c0_7 = arith.constant 0 : index
    %12 = vector.load %arg4[%c0_6, %c0_7] : memref<32x32xf32, #tpu.memory_space<vmem>>, vector<32x32xf32>
    %cst_8 = arith.constant dense<0.000000e+00> : vector<16x32xf32>
    %13 = tpu.matmul %11, %12, %cst_8 {dimension_numbers = #tpu.dot_dimension_numbers<[1], [0], [0], [1], [0, 0, 1, 1], [], []>} : vector<16x32xf32>, vector<32x32xf32>, vector<16x32xf32> -> vector<16x32xf32>
    %c0_9 = arith.constant 0 : index
    %c0_10 = arith.constant 0 : index
    %14 = vector.load %arg5[%c0_9, %c0_10] : memref<1x32xf32, #tpu.memory_space<vmem>>, vector<1x32xf32>
    %15 = vector.broadcast %14 : vector<1x32xf32> to vector<16x32xf32>
    %16 = arith.addf %13, %15 : vector<16x32xf32>
    %c0_11 = arith.constant 0 : index
    %c0_12 = arith.constant 0 : index
    %17 = vector.load %arg6[%c0_11, %c0_12] : memref<32x32xf32, #tpu.memory_space<vmem>>, vector<32x32xf32>
    %cst_13 = arith.constant dense<0.000000e+00> : vector<16x32xf32>
    %18 = tpu.matmul %11, %17, %cst_13 {dimension_numbers = #tpu.dot_dimension_numbers<[1], [0], [0], [1], [0, 0, 1, 1], [], []>} : vector<16x32xf32>, vector<32x32xf32>, vector<16x32xf32> -> vector<16x32xf32>
    %c0_14 = arith.constant 0 : index
    %c0_15 = arith.constant 0 : index
    %19 = vector.load %arg7[%c0_14, %c0_15] : memref<1x32xf32, #tpu.memory_space<vmem>>, vector<1x32xf32>
    %20 = vector.broadcast %19 : vector<1x32xf32> to vector<16x32xf32>
    %21 = arith.addf %18, %20 : vector<16x32xf32>
    %c0_16 = arith.constant 0 : index
    %c0_17 = arith.constant 0 : index
    %22 = vector.load %arg1[%c0_16, %c0_17] : memref<16x32xf32, #tpu.memory_space<vmem>>, vector<16x32xf32>
    %cst_18 = arith.constant dense<0.000000e+00> : vector<16xf32>
    %23 = vector.multi_reduction <add>, %22, %cst_18 [1] : vector<16x32xf32> to vector<16xf32>
    %24 = vector.shape_cast %23 : vector<16xf32> to vector<16x1xf32>
    %cst_19 = arith.constant 3.200000e+01 : f32
    %25 = vector.broadcast %cst_19 : f32 to vector<16x1xf32>
    %26 = arith.divf %24, %25 : vector<16x1xf32>
    %27 = vector.broadcast %26 : vector<16x1xf32> to vector<16x32xf32>
    %28 = arith.subf %22, %27 : vector<16x32xf32>
    %29 = arith.mulf %28, %28 : vector<16x32xf32>
    %cst_20 = arith.constant dense<0.000000e+00> : vector<16xf32>
    %30 = vector.multi_reduction <add>, %29, %cst_20 [1] : vector<16x32xf32> to vector<16xf32>
    %31 = vector.shape_cast %30 : vector<16xf32> to vector<16x1xf32>
    %cst_21 = arith.constant 3.200000e+01 : f32
    %32 = vector.broadcast %cst_21 : f32 to vector<16x1xf32>
    %33 = arith.divf %31, %32 : vector<16x1xf32>
    %cst_22 = arith.constant 9.99999974E-6 : f32
    %34 = vector.broadcast %cst_22 : f32 to vector<16x1xf32>
    %35 = arith.addf %33, %34 : vector<16x1xf32>
    %36 = math.rsqrt %35 : vector<16x1xf32>
    %37 = vector.broadcast %36 : vector<16x1xf32> to vector<16x32xf32>
    %38 = arith.mulf %28, %37 : vector<16x32xf32>
    %cst_23 = arith.constant 1.000000e+00 : f32
    %39 = vector.broadcast %cst_23 : f32 to vector<16x32xf32>
    %40 = arith.addf %39, %16 : vector<16x32xf32>
    %41 = arith.mulf %38, %40 : vector<16x32xf32>
    %42 = arith.addf %41, %21 : vector<16x32xf32>
    %c0_24 = arith.constant 0 : index
    %c0_25 = arith.constant 0 : index
    %43 = vector.load %arg8[%c0_24, %c0_25] : memref<16x32xf32, #tpu.memory_space<vmem>>, vector<16x32xf32>
    tpu.vector_store %arg8[%c0_24, %c0_25], %42 {strides = array<i32>} : memref<16x32xf32, #tpu.memory_space<vmem>>, vector<16x32xf32>,
    return
  }
  func.func @transform_0(%arg0: i32) -> (i32, i32) {
    %c0_i32 = arith.constant 0 : i32
    %c0_i32_0 = arith.constant 0 : i32
    return %arg0, %c0_i32 : i32, i32
  }
  func.func @transform_1(%arg0: i32) -> (i32, i32) {
    %c0_i32 = arith.constant 0 : i32
    %c0_i32_0 = arith.constant 0 : i32
    %c0_i32_1 = arith.constant 0 : i32
    return %c0_i32, %c0_i32_0 : i32, i32
  }
  func.func @transform_2(%arg0: i32) -> (i32, i32) {
    %c0_i32 = arith.constant 0 : i32
    %c0_i32_0 = arith.constant 0 : i32
    %c0_i32_1 = arith.constant 0 : i32
    return %c0_i32, %c0_i32_0 : i32, i32
  }
  func.func @transform_3(%arg0: i32) -> (i32, i32) {
    %c0_i32 = arith.constant 0 : i32
    %c0_i32_0 = arith.constant 0 : i32
    %c0_i32_1 = arith.constant 0 : i32
    return %c0_i32, %c0_i32_0 : i32, i32
  }
  func.func @transform_4(%arg0: i32) -> (i32, i32) {
    %c0_i32 = arith.constant 0 : i32
    %c0_i32_0 = arith.constant 0 : i32
    %c0_i32_1 = arith.constant 0 : i32
    return %c0_i32, %c0_i32_0 : i32, i32
  }
  func.func @transform_5(%arg0: i32) -> (i32, i32) {
    %c0_i32 = arith.constant 0 : i32
    %c0_i32_0 = arith.constant 0 : i32
    %c0_i32_1 = arith.constant 0 : i32
    return %c0_i32, %c0_i32_0 : i32, i32
  }
  func.func @transform_6(%arg0: i32) -> (i32, i32) {
    %c0_i32 = arith.constant 0 : i32
    %c0_i32_0 = arith.constant 0 : i32
    %c0_i32_1 = arith.constant 0 : i32
    return %c0_i32, %c0_i32_0 : i32, i32
  }
  func.func @transform_7(%arg0: i32) -> (i32, i32) {
    %c0_i32 = arith.constant 0 : i32
    %c0_i32_0 = arith.constant 0 : i32
    return %arg0, %c0_i32 : i32, i32
  }
}

</mosaic_0001>

<bundles_post_ra>
// kernel: tpu_custom_call.1
= control target key start
LH: loop header
LB: loop body
LE: loop exit
PB: predicated region body
PF: predicated region fallthrough
CT: control target
= control target key end

     0   :  { %12 = vsyncpa [#allocation3], 0  ;;  %s803_s0 = inlined_call_operand.hbm [shape: f32[16,32], index: 0, kind: input, shape index: {}]   ;;  %s804_s1 = inlined_call_operand.hbm [shape: f32[32,32], index: 1, kind: input, shape index: {}]   ;;  %s805_s2 = inlined_call_operand.vmem [shape: f32[1,32], index: 2, kind: input, shape index: {}]   ;;  %s806_s3 = inlined_call_operand.hbm [shape: f32[32,32], index: 3, kind: input, shape index: {}]   ;;  %s807_s4 = inlined_call_operand.vmem [shape: f32[1,32], index: 4, kind: input, shape index: {}]   ;;  %s808_s5 = inlined_call_operand.hbm [shape: f32[32,32], index: 5, kind: input, shape index: {}]   ;;  %s809_s6 = inlined_call_operand.vmem [shape: f32[1,32], index: 6, kind: input, shape index: {}]   ;;  %s810_s7 = inlined_call_operand.hbm [shape: f32[16,32], index: 7, kind: output, shape index: {}]  }
   0x1   :  { %13 = vsyncpa [#allocation6], 0 }
   0x2   :  { %14 = vsyncpa [#allocation9], 0 }
   0x3   :  { %15 = vsyncpa [#allocation4], 0  ;;  %s646_s24 = smov [#allocation5]   ;;  %s647_s26 = smov [#allocation2]  }
   0x4   :  { %s33_s25 = sshll.u32 %s646_s24, 4  ;;  %s21_s27 = sshll.u32 %s647_s26, 4  ;;  %s34_s25 = int_to_ptr.vmem [resolvable:$true] %s33_s25  ;;  %s693_s27 = int_to_ptr.vmem [resolvable:$true] %s21_s27 }
   0x5   :  { %s528_s30 = scalar_lea.hbm %s804_s1, 512 }
   0x6   :  { %p529_p0 = scmp.ne.s32.totalorder %s804_s1, %s528_s30  ;;  %p532_p1 = scmp.lt.u32.totalorder %s528_s30, %s804_s1 }
   0x8   :  { %p534_p2 = pnand %p532_p1, %p529_p0 }
   0xa   :  { %537 = shalt.err (!%p534_p2)
}
   0xb   :  { %s538_s12 = scalar_lea.vmem %s34_s25, 512  ;;  %p543_p4 = scmp.lt.s32.totalorder %s34_s25, %s34_s25 }
   0xc   :  { %p539_p3 = scmp.ne.s32.totalorder %s34_s25, %s538_s12  ;;  %p544_p5 = scmp.lt.s32.totalorder %s538_s12, %s538_s12 }
   0xe   :  { %p545_p6 = por %p544_p5, %p543_p4 }
  0x10   :  { %p546_p7 = pnand %p545_p6, %p539_p3 }
  0x12   :  { %549 = shalt.err (!%p546_p7)
}
  0x13   :  { %s648_s13 = smov 128   ;;  %s649_s14 = smov 8  }
  0x14   :  { %39 = dma.hbm_to_vmem [thread:$0]  %s804_s1, 512, %s34_s25, [#allocation6], %s648_s13, %s648_s13, %s649_s14  }
  0x15   :  { %s550_s19 = scalar_lea.hbm %s803_s0, 256 }
  0x16   :  { %p551_p8 = scmp.ne.s32.totalorder %s803_s0, %s550_s19  ;;  %p554_p9 = scmp.lt.u32.totalorder %s550_s19, %s803_s0 }
  0x18   :  { %p556_p10 = pnand %p554_p9, %p551_p8 }
  0x1a   :  { %559 = shalt.err (!%p556_p10)
}
  0x1b   :  { %s560_s24 = scalar_lea.vmem %s693_s27, 256  ;;  %p565_p12 = scmp.lt.s32.totalorder %s693_s27, %s693_s27 }
  0x1c   :  { %p561_p11 = scmp.ne.s32.totalorder %s693_s27, %s560_s24  ;;  %p566_p13 = scmp.lt.s32.totalorder %s560_s24, %s560_s24 }
  0x1e   :  { %p567_p0 = por %p566_p13, %p565_p12 }
  0x20   :  { %p568_p1 = pnand %p567_p0, %p561_p11 }
  0x22   :  { %571 = shalt.err (!%p568_p1)
}
  0x23   :  { %27 = dma.hbm_to_vmem [thread:$0]  %s803_s0, 256, %s693_s27, [#allocation3], %s648_s13, %s648_s13, %s649_s14  }
  0x24   :  { %s650_s26 = smov [#allocation7]   ;;  %s651_s29 = smov [#allocation8]  }
  0x25   :  { %s47_s28 = sshll.u32 %s650_s26, 4  ;;  %s61_s30 = sshll.u32 %s651_s29, 4  ;;  %s48_s28 = int_to_ptr.vmem [resolvable:$true] %s47_s28  ;;  %s730_s30 = int_to_ptr.vmem [resolvable:$true] %s61_s30 }
  0x26   :  { %s572_s10 = scalar_lea.hbm %s806_s3, 512 }
  0x27   :  { %p573_p2 = scmp.ne.s32.totalorder %s806_s3, %s572_s10  ;;  %p576_p3 = scmp.lt.u32.totalorder %s572_s10, %s806_s3 }
  0x29   :  { %p578_p4 = pnand %p576_p3, %p573_p2 }
  0x2b   :  { %581 = shalt.err (!%p578_p4)
}
  0x2c   :  { %s582_s0 = scalar_lea.vmem %s48_s28, 512  ;;  %p587_p6 = scmp.lt.s32.totalorder %s48_s28, %s48_s28 }
  0x2d   :  { %p583_p5 = scmp.ne.s32.totalorder %s48_s28, %s582_s0  ;;  %p588_p7 = scmp.lt.s32.totalorder %s582_s0, %s582_s0 }
  0x2f   :  { %p589_p8 = por %p588_p7, %p587_p6 }
  0x31   :  { %p590_p9 = pnand %p589_p8, %p583_p5 }
  0x33   :  { %593 = shalt.err (!%p590_p9)
}
  0x34   :  { %53 = dma.hbm_to_vmem [thread:$0]  %s806_s3, 512, %s48_s28, [#allocation6], %s648_s13, %s648_s13, %s649_s14  }
  0x35   :  { %s594_s20 = scalar_lea.hbm %s808_s5, 512 }
  0x36   :  { %p595_p10 = scmp.ne.s32.totalorder %s808_s5, %s594_s20  ;;  %p598_p11 = scmp.lt.u32.totalorder %s594_s20, %s808_s5 }
  0x38   :  { %p600_p12 = pnand %p598_p11, %p595_p10 }
  0x3a   :  { %603 = shalt.err (!%p600_p12)
}
  0x3b   :  { %s604_s1 = scalar_lea.vmem %s730_s30, 512  ;;  %p609_p0 = scmp.lt.s32.totalorder %s730_s30, %s730_s30 }
  0x3c   :  { %p605_p13 = scmp.ne.s32.totalorder %s730_s30, %s604_s1  ;;  %p610_p1 = scmp.lt.s32.totalorder %s604_s1, %s604_s1 }
  0x3e   :  { %p611_p2 = por %p610_p1, %p609_p0 }
  0x40   :  { %p612_p3 = pnand %p611_p2, %p605_p13 }
  0x42   :  { %615 = shalt.err (!%p612_p3)
}
  0x43   :  { %67 = dma.hbm_to_vmem [thread:$0]  %s808_s5, 512, %s730_s30, [#allocation9], %s648_s13, %s648_s13, %s649_s14  }
  0x44   :  { %638 = dma.done.wait [#allocation3], 256  }
  0x45   :  { %639 = vsyncadd [#allocation3], 4294967040 }
  0x46   :  { %640 = dma.done.wait [#allocation6], 1024  }
  0x47   :  { %641 = vsyncadd [#allocation6], 4294966272 }
  0x48   :  { %642 = dma.done.wait [#allocation9], 512  }
  0x49   :  { %643 = vsyncadd [#allocation9], 4294966784  ;;  %vm95_vm0 = vcmask 261120   ;;  %v82_v0 = vld [vmem:[#allocation2] sm:$0xff]  ;;  %v84_v1 = vld [vmem:[#allocation5] sm:$0xff]  ;;  %s652_s8 = smov [#allocation10]  }
  0x4a   :  { %v85_v2 = vld [vmem:[#allocation5 + $0x8] sm:$0xff]  ;;  %v369_v3 = vsel %vm95_vm0, %v82_v0, 0.0  ;;  %v83_v5 = vld [vmem:[#allocation2 + $0x8] sm:$0xff]  ;;  %v86_v6 = vld [vmem:[#allocation5 + $0x10] sm:$0xff]  ;;  %460 = vmatprep.mubr.msk.f32.mxu0 %vm95_vm0, %v82_v0 }
  0x4b   :  { %v485_v4 = vpack.c.bf16 %v85_v2, %v84_v1  ;;  %v87_v7 = vld [vmem:[#allocation5 + $0x18] sm:$0xff]  ;;  %370 = vadd.xlane.f32.xlu0 %v369_v3  ;;  %v372_v9 = vsel %vm95_vm0, %v83_v5, 0.0  ;;  %v191_v10 = vld [vmem:[#allocation7] sm:$0xff]  ;;  %v192_v11 = vld [vmem:[#allocation7 + $0x8] sm:$0xff] }
  0x4c   :  { %v489_v8 = vpack.c.bf16 %v87_v7, %v86_v6  ;;  %v283_v12 = vld [vmem:[#allocation8] sm:$0xff]  ;;  %v493_v13 = vpack.c.bf16 %v192_v11, %v191_v10  ;;  %v284_v14 = vld [vmem:[#allocation8 + $0x8] sm:$0xff]  ;;  %v193_v16 = vld [vmem:[#allocation7 + $0x10] sm:$0xff] }
  0x4d   :  { %486 = vmatprep.subr.bf16.mxu0 %v485_v4  ;;  %v501_v15 = vpack.c.bf16 %v284_v14, %v283_v12  ;;  %v194_v17 = vld [vmem:[#allocation7 + $0x18] sm:$0xff]  ;;  %v285_v18 = vld [vmem:[#allocation8 + $0x10] sm:$0xff] }
  0x4e   :  { %488 = vmatpush3.bf16.msra.mxu0 %v485_v4  ;;  %494 = vmatprep.subr.bf16.mxu1 %v493_v13  ;;  %v497_v19 = vpack.c.bf16 %v194_v17, %v193_v16  ;;  %v286_v20 = vld [vmem:[#allocation8 + $0x18] sm:$0xff]  ;;  %v423_v32 = vld [vmem:[%s805_s2] ss:$0 sm:$0xff] }
  0x4f   :  { %490 = vmatprep.subr.bf16.mxu0 %v489_v8  ;;  %373 = vadd.xlane.f32.xlu0 %v372_v9  ;;  %v505_v21 = vpack.c.bf16 %v286_v20, %v285_v18  ;;  %v428_v53 = vld [vmem:[%s807_s4] ss:$0 sm:$0xff]  ;;  %s409_s4 = sshll.u32 %s652_s8, 4  ;;  %s410_s4 = int_to_ptr.vmem [resolvable:$true] %s409_s4 }
  0x50   :  { %496 = vmatpush3.bf16.msra.mxu1 %v493_v13  ;;  %v431_v61 = vld [vmem:[%s809_s6] ss:$0 sm:$0xff]  ;;  %s616_s9 = scalar_lea.vmem %s410_s4, 256  ;;  %p621_p5 = scmp.lt.s32.totalorder %s410_s4, %s410_s4 }
  0x51   :  { %498 = vmatprep.subr.bf16.mxu1 %v497_v19  ;;  %p617_p4 = scmp.ne.s32.totalorder %s410_s4, %s616_s9  ;;  %p622_p6 = scmp.lt.s32.totalorder %s616_s9, %s616_s9 }
  0x52   :  { %492 = vmatpush3.bf16.msra.mxu0 %v489_v8 }
  0x53   :  { %502 = vmatprep.subr.bf16.mxu0 %v501_v15  ;;  %p623_p7 = por %p622_p6, %p621_p5 }
  0x54   :  { %500 = vmatpush3.bf16.msra.mxu1 %v497_v19 }
  0x55   :  { %461 = vmatmul.mubr.msk.f32.vlgmr.msra.gmra.mrb[0].mxu0 %vm95_vm0, %v83_v5  ;;  %p624_p8 = pnand %p623_p7, %p617_p4 }
  0x56   :  { %504 = vmatpush3.bf16.msra.mxu0 %v501_v15 }
  0x57   :  { %506 = vmatprep.subr.bf16.mxu0 %v505_v21 }
  0x5a   :  { %508 = vmatpush3.bf16.msra.mxu0 %v505_v21 }
  0xd8   :  { %v371_v22 = vpop.xlane.xlu0 %370 }
  0xd9   :  { %v376_v23 = vmul.f32 0.03125, %v371_v22 }
  0xdb   :  { %v378_v24 = vsub.f32 %v82_v0, %v376_v23 }
  0xdc   :  { %v374_v25 = vpop.xlane.xlu0 %373 }
  0xdd   :  { %v377_v26 = vmul.f32 0.03125, %v374_v25  ;;  %v380_v27 = vmul.f32 %v378_v24, %v378_v24 }
  0xdf   :  { %v379_v28 = vsub.f32 %v83_v5, %v377_v26  ;;  %v382_v29 = vsel %vm95_vm0, %v380_v27, 0.0 }
  0xe0   :  { %383 = vadd.xlane.f32.xlu1 %v382_v29 }
  0xe1   :  { %v381_v30 = vmul.f32 %v379_v28, %v379_v28 }
  0xe3   :  { %v385_v31 = vsel %vm95_vm0, %v381_v30, 0.0 }
  0xe4   :  { %386 = vadd.xlane.f32.xlu1 %v385_v31 }
 0x128   :  { %v462_v33 = vpop.f32.mrb[0].mxu0 }
 0x129   :  { %v174_v34 = vadd.f32 %v462_v33, %v423_v32  ;;  %v168_v35 = vpop.f32.mrb[1].mxu0 }
 0x12a   :  { %v169_v36 = vadd.f32 %v423_v32, %v168_v35 }
 0x12b   :  { %v427_v37 = vmul.f32 -1.442695, %v174_v34 }
 0x12c   :  { %v426_v38 = vmul.f32 -1.442695, %v169_v36 }
 0x12d   :  { %516 = vpow2.f32 %v427_v37 }
 0x12e   :  { %518 = vpow2.f32 %v426_v38 }
 0x137   :  { %v517_v39 = vpop.eup %516 }
 0x138   :  { %v519_v40 = vpop.eup %518  ;;  %v184_v41 = vadd.f32 1.0, %v517_v39 }
 0x139   :  { %v183_v42 = vadd.f32 1.0, %v519_v40 }
 0x13a   :  { %520 = vrcp.f32 %v184_v41 }
 0x13b   :  { %522 = vrcp.f32 %v183_v42 }
 0x144   :  { %v521_v43 = vpop.eup %520 }
 0x145   :  { %v523_v44 = vpop.eup %522  ;;  %v190_v46 = vmul.f32 %v521_v43, %v174_v34 }
 0x146   :  { %v189_v45 = vmul.f32 %v523_v44, %v169_v36 }
 0x148   :  { %471 = vmatprep.mubr.msk.f32.mxu1 %vm95_vm0, %v189_v45  ;;  %482 = vmatprep.mubr.msk.f32.mxu0 %vm95_vm0, %v189_v45 }
 0x149   :  { %472 = vmatmul.mubr.msk.f32.vlgmr.msra.gmra.mrb[0].mxu1 %vm95_vm0, %v190_v46  ;;  %483 = vmatmul.mubr.msk.f32.vlgmr.msra.gmra.mrb[2].mxu0 %vm95_vm0, %v190_v46 }
 0x16d   :  { %v384_v47 = vpop.xlane.xlu1 %383 }
 0x16e   :  { %v388_v50 = vmul.f32 0.03125, %v384_v47 }
 0x170   :  { %v390_v52 = vadd.f32 1e-05, %v388_v50 }
 0x171   :  { %v387_v48 = vpop.xlane.xlu1 %386 }
 0x172   :  { %v389_v49 = vmul.f32 0.03125, %v387_v48 }
 0x174   :  { %v391_v51 = vadd.f32 1e-05, %v389_v49 }
 0x176   :  { %524 = vrsqrt.f32 %v391_v51 }
 0x177   :  { %526 = vrsqrt.f32 %v390_v52 }
 0x180   :  { %v525_v54 = vpop.eup %524 }
 0x181   :  { %v527_v57 = vpop.eup %526  ;;  %v395_v63 = vmul.f32 %v525_v54, %v379_v28 }
 0x182   :  { %v394_v1 = vmul.f32 %v527_v57, %v378_v24 }
 0x21c   :  { %v473_v55 = vpop.f32.mrb[0].mxu1  ;;  %v484_v56 = vpop.f32.mrb[2].mxu0 }
 0x21d   :  { %v280_v58 = vadd.f32 %v473_v55, %v428_v53  ;;  %v274_v59 = vpop.f32.mrb[1].mxu1  ;;  %v360_v60 = vpop.f32.mrb[3].mxu0  ;;  %v366_v4 = vadd.f32 %v484_v56, %v431_v61 }
 0x21e   :  { %v275_v62 = vadd.f32 %v428_v53, %v274_v59  ;;  %v361_v6 = vadd.f32 %v431_v61, %v360_v60 }
 0x21f   :  { %v397_v0 = vadd.f32 1.0, %v280_v58 }
 0x220   :  { %v396_v2 = vadd.f32 1.0, %v275_v62 }
 0x221   :  { %v399_v3 = vmul.f32 %v397_v0, %v395_v63 }
 0x222   :  { %v398_v5 = vmul.f32 %v396_v2, %v394_v1 }
 0x223   :  { %v401_v7 = vadd.f32 %v399_v3, %v366_v4 }
 0x224   :  { %v400_v8 = vadd.f32 %v398_v5, %v361_v6 }
 0x225   :  { %403 = vst.msk [vmem:[#allocation10 + $0x8] sm:$0xff] %vm95_vm0, %v401_v7 }
 0x226   :  { %402 = vst.msk [vmem:[#allocation10] sm:$0xff] %vm95_vm0, %v400_v8 }
 0x227   :  { %627 = shalt.err (!%p624_p8)
}
 0x228   :  { %s628_s11 = scalar_lea.hbm %s810_s7, 256 }
 0x229   :  { %p629_p9 = scmp.ne.s32.totalorder %s810_s7, %s628_s11  ;;  %p632_p10 = scmp.lt.u32.totalorder %s628_s11, %s810_s7 }
 0x22b   :  { %p634_p11 = pnand %p632_p10, %p629_p9 }
 0x22d   :  { %637 = shalt.err (!%p634_p11)
}
 0x22e   :  { %415 = dma.vmem_to_hbm [thread:$0]  %s410_s4, 256, %s810_s7, [#allocation4], %s648_s13, %s648_s13, %s649_s14  }
 0x22f   :  { %644 = dma.done.wait [#allocation4], 256  }
 0x230   :  { %645 = vsyncadd [#allocation4], 4294967040 }
 0x231   :  { %419 = vsyncpa [#allocation3], 1 }
 0x232   :  { %420 = vsyncpa [#allocation6], 1 }
 0x233   :  { %421 = vsyncpa [#allocation9], 1 }
 0x234   :  { %422 = vsyncpa [#allocation4], 1 }

</bundles_post_ra>
